<compile_context>
chip_gen: v6e
topology: v6e:2x2x1
jax: 0.10.0
libtpu: 0.0.40
codegen_flags: <defaults>
</compile_context>

<pallas_src>
import jax
import jax.numpy as jnp
from jax.experimental import pallas as pl
from jax.experimental.pallas import tpu as pltpu


def _round_up(x, m):
    return (x + m - 1) // m * m


def _cdiv(a, b):
    return -(-a // b)


def _pick_tile(dim, cap, align):
    """Largest useful tile <= cap.

    If the whole dim fits under the cap, use the full dim as a single block
    (a block equal to the full array dim never needs (8,128) alignment and
    wastes nothing).  Otherwise pick a waste-minimising `align` multiple; the
    ragged last block is handled by Pallas (OOB writes discarded)."""
    if dim <= cap:
        return dim
    nblk = _cdiv(dim, cap)
    return _round_up(_cdiv(dim, nblk), align)


# ----------------------------------------------------------------------------
# Kernels
# ----------------------------------------------------------------------------

def _linear_kernel_fullk(x_ref, w_ref, b_ref, o_ref):
    """Whole K in one block: one MXU pass per (tm, tn) tile, bias fused."""
    acc = jnp.dot(x_ref[...], w_ref[...], preferred_element_type=jnp.float32)
    o_ref[...] = (acc + b_ref[...].astype(jnp.float32)).astype(o_ref.dtype)


def _linear_kernel_ksplit_f32(x_ref, w_ref, b_ref, o_ref):
    """K split across grid axis 2; f32 output -> accumulate directly into the
    resident output block (no scratch, no epilogue copy)."""
    k = pl.program_id(2)

    @pl.when(k == 0)
    def _init():
        o_ref[...] = jnp.zeros_like(o_ref)

    o_ref[...] += jnp.dot(x_ref[...], w_ref[...],
                          preferred_element_type=jnp.float32)

    @pl.when(k == pl.num_programs(2) - 1)
    def _finalize():
        o_ref[...] += b_ref[...].astype(jnp.float32)


def _linear_kernel_ksplit_acc(x_ref, w_ref, b_ref, o_ref, acc_ref):
    """K split, narrow output dtype: keep an f32 VMEM accumulator, cast once."""
    k = pl.program_id(2)

    @pl.when(k == 0)
    def _init():
        acc_ref[...] = jnp.zeros_like(acc_ref)

    acc_ref[...] += jnp.dot(x_ref[...], w_ref[...],
                            preferred_element_type=jnp.float32)

    @pl.when(k == pl.num_programs(2) - 1)
    def _finalize():
        o_ref[...] = (acc_ref[...] + b_ref[...].astype(jnp.float32)).astype(
            o_ref.dtype)


# ----------------------------------------------------------------------------
# Wrapper
# ----------------------------------------------------------------------------

_TM_CAP = 256       # modest M tile; reuse is driven by tn / tk
_TN_CAP = 512
_FULL_K_CAP = 4096  # collapse the K grid axis when K fits this comfortably
_TK_SPLIT = 1024    # K tile when K is too large to collapse


def linear_forward_pallas(x, w_t, bias, *, tm=None, tn=None, tk=None,
                          compute_dtype=None, out_dtype=None):
    """y = x @ w_t + bias with an M/N(/K)-tiled Pallas kernel.

    x:    (M, K)
    w_t:  (K, N)   -- weight already stored transposed
    bias: (N,)
    """
    M, K = x.shape
    K2, N = w_t.shape
    assert K == K2, (K, K2)
    assert bias.shape == (N,)

    if out_dtype is None:
        out_dtype = x.dtype
    if compute_dtype is not None:
        # Optional bf16 compute path: MXU is bf16-native, f32 accumulation.
        x = x.astype(compute_dtype)
        w_t = w_t.astype(compute_dtype)

    in_dt = x.dtype
    sub_align = 16 if in_dt == jnp.bfloat16 else 8

    # ---- tile selection ----------------------------------------------------
    if tm is None:
        tm = _pick_tile(M, _TM_CAP, sub_align)
    if tn is None:
        tn = _pick_tile(N, _TN_CAP, 128)
    if tk is None:
        tk = K if K <= _FULL_K_CAP else _TK_SPLIT

    # v7x megacore: 2 TensorCores are fed by the 'parallel' grid axes.  If both
    # collapsed to a single block on a non-tiny problem, split M (or N).
    if tm >= M and tn >= N:
        if M >= 16:
            tm = _round_up(_cdiv(M, 2), sub_align)
        elif N >= 256:
            tn = _round_up(_cdiv(N, 2), 128)

    full_k = tk >= K
    if full_k:
        tk = K
        grid = (_cdiv(M, tm), _cdiv(N, tn))
        semantics = ("parallel", "parallel")
    else:
        # The K overhang MUST be zero-filled: garbage in OOB K reads would
        # corrupt valid accumulations.  (M/N overhang needs no padding.)
        Kp = _round_up(K, tk)
        if Kp != K:
            x = jnp.pad(x, ((0, 0), (0, Kp - K)))
            w_t = jnp.pad(w_t, ((0, Kp - K), (0, 0)))
        grid = (_cdiv(M, tm), _cdiv(N, tn), Kp // tk)
        semantics = ("parallel", "parallel", "arbitrary")

    b2d = bias.reshape(1, N)

    # ---- VMEM budget / compiler params --------------------------------------
    in_sz = jnp.dtype(in_dt).itemsize
    out_sz = jnp.dtype(out_dtype).itemsize
    working = (2 * (tm * tk + tk * tn + tn) * in_sz    # double-buffered inputs
               + 2 * tm * tn * out_sz)                 # double-buffered output
    use_acc_scratch = (not full_k) and jnp.dtype(out_dtype) != jnp.dtype(jnp.float32)
    if use_acc_scratch:
        working += tm * tn * 4
    vmem_limit = int(min(64 * 1024 * 1024,
                         max(32 * 1024 * 1024, working + working // 4)))

    cost = pl.CostEstimate(
        flops=2 * M * N * K,
        transcendentals=0,
        bytes_accessed=M * K * in_sz + K * N * in_sz + M * N * out_sz + N * 4,
    )

    # ---- block specs / kernel selection -------------------------------------
    if full_k:
        kernel = _linear_kernel_fullk
        in_specs = [
            pl.BlockSpec((tm, tk), lambda i, j: (i, 0)),
            pl.BlockSpec((tk, tn), lambda i, j: (0, j)),
            pl.BlockSpec((1, tn), lambda i, j: (0, j)),
        ]
        out_specs = pl.BlockSpec((tm, tn), lambda i, j: (i, j))
        scratch_shapes = []
    else:
        kernel = _linear_kernel_ksplit_acc if use_acc_scratch else _linear_kernel_ksplit_f32
        in_specs = [
            pl.BlockSpec((tm, tk), lambda i, j, k: (i, k)),
            pl.BlockSpec((tk, tn), lambda i, j, k: (k, j)),
            pl.BlockSpec((1, tn), lambda i, j, k: (0, j)),  # k-invariant bias
        ]
        out_specs = pl.BlockSpec((tm, tn), lambda i, j, k: (i, j))
        scratch_shapes = ([pltpu.VMEM((tm, tn), jnp.float32)]
                          if use_acc_scratch else [])

    out = pl.pallas_call(
        kernel,
        out_shape=jax.ShapeDtypeStruct((M, N), out_dtype),
        grid_spec=pltpu.PrefetchScalarGridSpec(
            num_scalar_prefetch=0,
            grid=grid,
            in_specs=in_specs,
            out_specs=out_specs,
            scratch_shapes=scratch_shapes,
        ),
        compiler_params=pltpu.CompilerParams(
            dimension_semantics=semantics,
            vmem_limit_bytes=vmem_limit,
        ),
        cost_estimate=cost,
    )(x, w_t, b2d)
    return out


def linear_forward(x, w_t, bias):
    """Public forward matching torch.nn.Linear: y = x @ W^T + b.

    Tiny problems (every dim < 128) are pure launch/DMA overhead for a custom
    kernel, so they route to XLA's fused matmul+bias; everything else uses the
    tiled Pallas kernel."""
    M, K = x.shape
    N = w_t.shape[1]
    if M < 128 and K < 128 and N < 128:
        return x @ w_t + bias
    return linear_forward_pallas(x, w_t, bias)


def init_linear_params(key, input_size, output_size, dtype=jnp.float32):
    """nn.Linear-style uniform(-1/sqrt(in), 1/sqrt(in)) init; weight stored
    pre-transposed as (IN, OUT) so forward never transposes.  No padding is
    needed at init: ragged M/N blocks are handled in-kernel, and K is only
    padded (per call) in the rare huge-K split path."""
    kw, kb = jax.random.split(key)
    bound = 1.0 / (input_size ** 0.5)
    w_t = jax.random.uniform(
        kw, (input_size, output_size), minval=-bound, maxval=bound,
        dtype=jnp.float32,
    ).astype(dtype)
    bias = jax.random.uniform(
        kb, (output_size,), minval=-bound, maxval=bound, dtype=jnp.float32
    )
    return w_t, bias


if __name__ == "__main__":
    # Module config (synthetic, deterministic): input_size=32, output_size=16.
    # opt / learning_rate only affect the optimizer, not the forward pass.
    input_size, output_size, batch = 32, 16, 8

    key = jax.random.PRNGKey(0)
    kx, kp, kx2, kp2, kx3, kp3 = jax.random.split(key, 6)

    w_t, bias = init_linear_params(kp, input_size, output_size)
    x = jax.random.normal(kx, (batch, input_size), dtype=jnp.float32)
    y_ref_small = x @ w_t + bias

    # 1) Public forward at the shipped tiny config (routes to fused XLA).
    y_small = linear_forward(x, w_t, bias)
    jax.block_until_ready(y_small)
    assert y_small.shape == (batch, output_size)
    assert jnp.allclose(y_small, y_ref_small, atol=1e-5, rtol=1e-5)

    # 2) Force the Pallas kernel at the same tiny config (full-K path,
    #    single ragged block, no padding) to verify end-to-end correctness.
    y_pallas = linear_forward_pallas(x, w_t, bias)
    jax.block_until_ready(y_pallas)
    assert y_pallas.shape == (batch, output_size)
    assert jnp.allclose(y_pallas, y_ref_small, atol=1e-5, rtol=1e-5)

    # 3) Full-K path with ragged M blocks and unaligned N (no wrapper padding,
    #    no output slice): M=300 -> tm=152, grid=(2,1).
    M2, K2, N2 = 300, 384, 300
    w2_t, b2 = init_linear_params(kp2, K2, N2)
    x2 = jax.random.normal(kx2, (M2, K2), dtype=jnp.float32)
    y2 = linear_forward_pallas(x2, w2_t, b2)
    jax.block_until_ready(y2)
    y2_ref = x2 @ w2_t + b2
    assert y2.shape == (M2, N2)
    assert jnp.allclose(y2, y2_ref, atol=1e-4, rtol=1e-4)

    # 4) Forced K-split path (accumulate into resident f32 output block):
    #    grid = (2, 2, 3).
    M3, K3, N3 = 256, 384, 256
    w3_t, b3 = init_linear_params(kp3, K3, N3)
    x3 = jax.random.normal(kx3, (M3, K3), dtype=jnp.float32)
    y3 = linear_forward_pallas(x3, w3_t, b3, tm=128, tn=128, tk=128)
    jax.block_until_ready(y3)
    y3_ref = x3 @ w3_t + b3
    assert jnp.allclose(y3, y3_ref, atol=1e-4, rtol=1e-4)

    # 5) K-split with a K overhang (K=400, tk=128 -> zero-padded to 512).
    M4, K4, N4 = 64, 400, 128
    kp4, kx4 = jax.random.split(kp3)
    w4_t, b4 = init_linear_params(kp4, K4, N4)
    x4 = jax.random.normal(kx4, (M4, K4), dtype=jnp.float32)
    y4 = linear_forward_pallas(x4, w4_t, b4, tk=128)
    jax.block_until_ready(y4)
    y4_ref = x4 @ w4_t + b4
    assert jnp.allclose(y4, y4_ref, atol=1e-4, rtol=1e-4)

    # 6) Optional bf16 compute path (f32 accumulation, f32 output) — loose check.
    y5 = linear_forward_pallas(x3, w3_t, b3, compute_dtype=jnp.bfloat16)
    jax.block_until_ready(y5)
    assert y5.shape == (M3, N3)
    assert float(jnp.max(jnp.abs(y5 - y3_ref))) < 0.25

    print("KERNEL_OK")
</pallas_src>

<mosaic_0001>
module attributes {stable_mosaic.version = 11 : i64} {
  func.func @_linear_kernel_fullk(%arg0: i32, %arg1: i32, %arg2: memref<8x32xf32, #tpu.memory_space<vmem>>, %arg3: memref<32x16xf32, #tpu.memory_space<vmem>>, %arg4: memref<1x16xf32, #tpu.memory_space<vmem>>, %arg5: memref<8x16xf32, #tpu.memory_space<vmem>>) attributes {dimension_semantics = [#tpu.dimension_semantics<parallel>, #tpu.dimension_semantics<parallel>], iteration_bounds = array<i64: 1, 1>, scalar_prefetch = 0 : i64, scratch_operands = 0 : i64, tpu.core_type = #tpu.core_type<tc>, window_params = [{transform_indices = @transform_0, window_bounds = array<i64: 8, 32>}, {transform_indices = @transform_1, window_bounds = array<i64: 32, 16>}, {transform_indices = @transform_2, window_bounds = array<i64: 1, 16>}, {transform_indices = @transform_3, window_bounds = array<i64: 8, 16>}]} {
    %c0 = arith.constant 0 : index
    %c0_0 = arith.constant 0 : index
    %0 = vector.load %arg2[%c0, %c0_0] : memref<8x32xf32, #tpu.memory_space<vmem>>, vector<8x32xf32>
    %c0_1 = arith.constant 0 : index
    %c0_2 = arith.constant 0 : index
    %1 = vector.load %arg3[%c0_1, %c0_2] : memref<32x16xf32, #tpu.memory_space<vmem>>, vector<32x16xf32>
    %cst = arith.constant dense<0.000000e+00> : vector<8x16xf32>
    %2 = tpu.matmul %0, %1, %cst {dimension_numbers = #tpu.dot_dimension_numbers<[1], [0], [0], [1], [0, 0, 1, 1], [], []>} : vector<8x32xf32>, vector<32x16xf32>, vector<8x16xf32> -> vector<8x16xf32>
    %c0_3 = arith.constant 0 : index
    %c0_4 = arith.constant 0 : index
    %3 = vector.load %arg4[%c0_3, %c0_4] : memref<1x16xf32, #tpu.memory_space<vmem>>, vector<1x16xf32>
    %4 = vector.broadcast %3 : vector<1x16xf32> to vector<8x16xf32>
    %5 = arith.addf %2, %4 : vector<8x16xf32>
    %c0_5 = arith.constant 0 : index
    %c0_6 = arith.constant 0 : index
    %6 = vector.load %arg5[%c0_5, %c0_6] : memref<8x16xf32, #tpu.memory_space<vmem>>, vector<8x16xf32>
    tpu.vector_store %arg5[%c0_5, %c0_6], %5 {strides = array<i32>} : memref<8x16xf32, #tpu.memory_space<vmem>>, vector<8x16xf32>,
    return
  }
  func.func @transform_0(%arg0: i32, %arg1: i32) -> (i32, i32) {
    %c0_i32 = arith.constant 0 : i32
    %c0_i32_0 = arith.constant 0 : i32
    return %arg0, %c0_i32 : i32, i32
  }
  func.func @transform_1(%arg0: i32, %arg1: i32) -> (i32, i32) {
    %c0_i32 = arith.constant 0 : i32
    %c0_i32_0 = arith.constant 0 : i32
    return %c0_i32, %arg1 : i32, i32
  }
  func.func @transform_2(%arg0: i32, %arg1: i32) -> (i32, i32) {
    %c0_i32 = arith.constant 0 : i32
    %c0_i32_0 = arith.constant 0 : i32
    return %c0_i32, %arg1 : i32, i32
  }
  func.func @transform_3(%arg0: i32, %arg1: i32) -> (i32, i32) {
    %c0_i32 = arith.constant 0 : i32
    return %arg0, %arg1 : i32, i32
  }
}

</mosaic_0001>

<bundles_post_ra>
// kernel: tpu_custom_call.1
= control target key start
LH: loop header
LB: loop body
LE: loop exit
PB: predicated region body
PF: predicated region fallthrough
CT: control target
= control target key end

     0   :  { %v160_v1 = vmov 0.0   ;;  %vm161_vm0 = vmmov 0   ;;  %s204_s0 = inlined_call_operand.vmem [shape: f32[8,32], index: 0, kind: input, shape index: {}]   ;;  %s205_s1 = inlined_call_operand.vmem [shape: f32[32,16], index: 1, kind: input, shape index: {}]   ;;  %s206_s2 = inlined_call_operand.vmem [shape: f32[1,16], index: 2, kind: input, shape index: {}]   ;;  %s207_s3 = inlined_call_operand.hbm [shape: f32[8,16], index: 3, kind: output, shape index: {}]  }
   0x1   :  { %v19_v0 = vld [vmem:[%s205_s1 + $0x18] sm:$0xff]  ;;  %124 = vmatprep.subr.mxu0 %v160_v1  ;;  %v18_v2 = vld [vmem:[%s205_s1 + $0x10] sm:$0xff]  ;;  %132 = vmatprep.mubr.msk.f32.mxu0 %vm161_vm0, %v160_v1 }
   0x2   :  { %125 = vmatpush3.msra.mxu0 %v19_v0 }
   0x3   :  { %8 = vsyncpa [#allocation3], 0  ;;  %126 = vmatprep.subr.mxu0 %v160_v1  ;;  %v17_v3 = vld [vmem:[%s205_s1 + $0x8] sm:$0xff]  ;;  %v16_v4 = vld [vmem:[%s205_s1] sm:$0xff]  ;;  %vm27_vm1 = vcmask 261120   ;;  %s162_s24 = smov [#allocation2]  }
   0x4   :  { %127 = vmatpush3.msra.mxu0 %v18_v2  ;;  %v15_v5 = vld [vmem:[%s204_s0] sm:$0xff]  ;;  %s109_s25 = sshll.u32 %s162_s24, 4  ;;  %vm101_vm2 = vcmask 130048   ;;  %s110_s25 = int_to_ptr.vmem [resolvable:$true] %s109_s25 }
   0x5   :  { %128 = vmatprep.subr.mxu0 %v160_v1  ;;  %v117_v6 = vld [vmem:[%s206_s2] ss:$0 sm:$0xff]  ;;  %s138_s1 = scalar_lea.vmem %s110_s25, 128  ;;  %p143_p1 = scmp.lt.s32.totalorder %s110_s25, %s110_s25 }
   0x6   :  { %129 = vmatpush3.msra.mxu0 %v17_v3  ;;  %p139_p0 = scmp.ne.s32.totalorder %s110_s25, %s138_s1  ;;  %p144_p2 = scmp.lt.s32.totalorder %s138_s1, %s138_s1 }
   0x7   :  { %130 = vmatprep.subr.mxu0 %v160_v1 }
   0x8   :  { %131 = vmatpush3.msra.mxu0 %v16_v4  ;;  %p145_p3 = por %p144_p2, %p143_p1 }
   0x9   :  { %133 = vmatmul.mubr.msk.f32.vlgmr.msra.gmra.mxu0 %vm27_vm1, %v15_v5 }
   0xa   :  { %p146_p4 = pnand %p145_p3, %p139_p0 }
  0xc9   :  { %v97_v7 = vpop.f32.mrf.mxu0 }
  0xca   :  { %v98_v8 = vadd.f32 %v117_v6, %v97_v7 }
  0xcb   :  { %v134_v9 = vpop.f32.mrf.mxu0 }
  0xcc   :  { %102 = vst.msk [vmem:[#allocation2] sm:$0xff] %vm101_vm2, %v98_v8 }
  0xcd   :  { %149 = shalt.err (!%p146_p4)
}
  0xce   :  { %112 = dma.vmem_to_hbm [thread:$0]  %s110_s25, 128, %s207_s3, [#allocation3]  }
  0xcf   :  { %158 = dma.done.wait [#allocation3], 128  }
  0xd0   :  { %159 = vsyncadd [#allocation3], 4294967168 }
  0xd1   :  { %116 = vsyncpa [#allocation3], 1 }

</bundles_post_ra>
